<compile_context>
chip_gen: v5e
topology: v5e:2x2
jax: 0.10.0
libtpu: 0.0.40
codegen_flags: <defaults>
</compile_context>

<pallas_src>
import functools

import jax
import jax.numpy as jnp
from jax.experimental import pallas as pl
from jax.experimental.pallas import tpu as pltpu


def _time2vec_fused_kernel(feat, x_ref, w_ref, b_ref, o_ref):
    # x_ref : (rows, F)      rows = block_b * S
    # w_ref : (F, F+K)       fused weight  [diag(wb) | wa]
    # b_ref : (rows, F+K)    fused bias    [bb | ba] tiled per sequence
    # o_ref : (rows, F+K)
    lin = (
        jnp.dot(x_ref[...], w_ref[...], preferred_element_type=jnp.float32)
        + b_ref[...]
    )
    col = jax.lax.broadcasted_iota(jnp.int32, lin.shape, dimension=1)
    out = jnp.where(col < feat, lin, jnp.sin(lin))
    o_ref[...] = out.astype(o_ref.dtype)


def time2vec_positional_encoding_batched(xb, wb, bb, wa, ba, *, block_b=None):
    """Batched Time2Vec: xb (B, S, 1, F) -> (B, S, 1, F+K). One pallas_call for all B."""
    B, S, one, F = xb.shape
    assert one == 1, "module only supports a singleton middle dim (tensordot dims=2)"
    K = wa.shape[-1]
    ba2 = jnp.asarray(ba, jnp.float32).reshape(-1, K)
    assert ba2.shape[0] == S, "sequence length must equal 40 (shape of ba)"
    O = F + K

    wb = jnp.asarray(wb, jnp.float32)
    bb = jnp.asarray(bb, jnp.float32)
    wa2 = jnp.asarray(wa, jnp.float32).reshape(F, K)

    # --- fused parameters, built once outside the kernel ---------------------
    w_fused = jnp.concatenate([jnp.diag(wb), wa2], axis=1)                       # (F, O)
    b_row = jnp.concatenate(
        [jnp.broadcast_to(bb.reshape(1, F), (S, F)), ba2], axis=1)               # (S, O)

    # --- batch tiling ---------------------------------------------------------
    if block_b is None:
        # Small enough for v7x's 64 MiB VMEM (double-buffered blocks << 32 MiB).
        block_b = max(1, min(B, 256))
    nb = pl.cdiv(B, block_b)
    b_pad = nb * block_b

    x2 = jnp.asarray(xb, jnp.float32).reshape(B, S, F)
    if b_pad != B:
        x2 = jnp.pad(x2, ((0, b_pad - B), (0, 0), (0, 0)))
    x2 = x2.reshape(b_pad * S, F)                                                # lane-dim = F
    bias_full = jnp.tile(b_row, (b_pad, 1))                                      # (b_pad*S, O)

    rows = block_b * S

    cost = pl.CostEstimate(
        flops=2 * b_pad * S * F * O + 2 * b_pad * S * O,
        transcendentals=b_pad * S * O,
        bytes_accessed=4 * (x2.size + w_fused.size + bias_full.size + b_pad * S * O),
    )

    out2 = pl.pallas_call(
        functools.partial(_time2vec_fused_kernel, F),
        out_shape=jax.ShapeDtypeStruct((b_pad * S, O), jnp.float32),
        grid_spec=pltpu.PrefetchScalarGridSpec(
            num_scalar_prefetch=0,
            grid=(nb,),
            in_specs=[
                pl.BlockSpec((rows, F), lambda i: (i, 0)),   # x rows for this batch tile
                pl.BlockSpec((F, O), lambda i: (0, 0)),      # fused weight (resident)
                pl.BlockSpec((rows, O), lambda i: (i, 0)),   # fused bias rows
            ],
            out_specs=pl.BlockSpec((rows, O), lambda i: (i, 0)),
        ),
        compiler_params=pltpu.CompilerParams(
            dimension_semantics=("parallel",),               # v7x: shard batch over 2 TCs
        ),
        cost_estimate=cost,
    )(x2, w_fused, bias_full)

    out = out2.reshape(b_pad, S, 1, O)[:B]
    return out.astype(xb.dtype)


def time2vec_positional_encoding(x, wb, bb, wa, ba):
    """Module-exact forward: x (S, 1, F) -> (S, 1, F+K)."""
    out = time2vec_positional_encoding_batched(x[None], wb, bb, wa, ba, block_b=1)
    return out[0]


def _reference(x, wb, bb, wa, ba):
    # Pure-JAX transcription of the PyTorch forward (single sequence).
    bias = wb * x + bb                                   # (S, 1, F)
    dp = jnp.tensordot(x, wa, axes=2) + ba               # (S, K) + (1, 40, K) -> (1, 40, K)
    wgts = jnp.sin(dp)
    wgts = jnp.swapaxes(wgts, -3, -2)                    # (40, 1, K)
    wgts = jnp.tile(wgts, (1, x.shape[1], 1))            # repeat(1, x.size(1), 1)
    return jnp.concatenate([bias, wgts[: x.shape[0]]], axis=-1)


if __name__ == "__main__":
    F = 24        # feature_number
    K = 8         # kernel_size
    S = 40        # sequence length (fixed by ba's shape in the module)
    B = 8         # batched sequences amortizing one pallas_call

    key = jax.random.PRNGKey(0)
    k1, k2, k3, k4, k5 = jax.random.split(key, 5)
    # Deterministic stand-ins for the module's uniform_(-1, 1) parameters.
    wb = jax.random.uniform(k1, (F,), jnp.float32, minval=-1.0, maxval=1.0)
    bb = jax.random.uniform(k2, (F,), jnp.float32, minval=-1.0, maxval=1.0)
    wa = jax.random.uniform(k3, (1, F, K), jnp.float32, minval=-1.0, maxval=1.0)
    ba = jax.random.uniform(k4, (1, 40, K), jnp.float32, minval=-1.0, maxval=1.0)
    xb = jax.random.normal(k5, (B, S, 1, F), jnp.float32)

    # 1) Module-exact single-sequence call.
    out1 = time2vec_positional_encoding(xb[0], wb, bb, wa, ba)
    out1 = jax.block_until_ready(out1)
    ref1 = _reference(xb[0], wb, bb, wa, ba)
    assert out1.shape == (S, 1, F + K), out1.shape
    assert jnp.allclose(out1, ref1, atol=1e-5, rtol=1e-5), "single-seq mismatch vs reference"

    # 2) Batched call: one pallas_call, grid over batch tiles, "parallel" semantics.
    outb = time2vec_positional_encoding_batched(xb, wb, bb, wa, ba, block_b=4)
    outb = jax.block_until_ready(outb)
    refb = jnp.stack([_reference(xb[i], wb, bb, wa, ba) for i in range(B)])
    assert outb.shape == (B, S, 1, F + K), outb.shape
    assert jnp.allclose(outb, refb, atol=1e-5, rtol=1e-5), "batched mismatch vs reference"

    print("KERNEL_OK")
</pallas_src>

<mosaic_0001>
module attributes {stable_mosaic.version = 11 : i64} {
  func.func @_time2vec_fused_kernel(%arg0: i32, %arg1: memref<40x24xf32, #tpu.memory_space<vmem>>, %arg2: memref<24x32xf32, #tpu.memory_space<vmem>>, %arg3: memref<40x32xf32, #tpu.memory_space<vmem>>, %arg4: memref<40x32xf32, #tpu.memory_space<vmem>>) attributes {dimension_semantics = [#tpu.dimension_semantics<parallel>], iteration_bounds = array<i64: 1>, scalar_prefetch = 0 : i64, scratch_operands = 0 : i64, tpu.core_type = #tpu.core_type<tc>, window_params = [{transform_indices = @transform_0, window_bounds = array<i64: 40, 24>}, {pipeline_mode = #tpu.pipeline_mode<synchronous>, transform_indices = @transform_1, window_bounds = array<i64: 24, 32>}, {transform_indices = @transform_2, window_bounds = array<i64: 40, 32>}, {transform_indices = @transform_3, window_bounds = array<i64: 40, 32>}]} {
    %c0 = arith.constant 0 : index
    %c0_0 = arith.constant 0 : index
    %0 = vector.load %arg1[%c0, %c0_0] : memref<40x24xf32, #tpu.memory_space<vmem>>, vector<40x24xf32>
    %c0_1 = arith.constant 0 : index
    %c0_2 = arith.constant 0 : index
    %1 = vector.load %arg2[%c0_1, %c0_2] : memref<24x32xf32, #tpu.memory_space<vmem>>, vector<24x32xf32>
    %cst = arith.constant dense<0.000000e+00> : vector<40x32xf32>
    %2 = tpu.matmul %0, %1, %cst {dimension_numbers = #tpu.dot_dimension_numbers<[1], [0], [0], [1], [0, 0, 1, 1], [], []>} : vector<40x24xf32>, vector<24x32xf32>, vector<40x32xf32> -> vector<40x32xf32>
    %c0_3 = arith.constant 0 : index
    %c0_4 = arith.constant 0 : index
    %3 = vector.load %arg3[%c0_3, %c0_4] : memref<40x32xf32, #tpu.memory_space<vmem>>, vector<40x32xf32>
    %4 = arith.addf %2, %3 : vector<40x32xf32>
    %5 = tpu.iota {dimensions = array<i32: 1>} : vector<40x32xi32>
    %c24_i32 = arith.constant 24 : i32
    %6 = vector.broadcast %c24_i32 : i32 to vector<40x32xi32>
    %7 = arith.cmpi slt, %5, %6 : vector<40x32xi32>
    %8 = math.sin %4 : vector<40x32xf32>
    %9 = arith.select %7, %4, %8 : vector<40x32xi1>, vector<40x32xf32>
    %c0_5 = arith.constant 0 : index
    %c0_6 = arith.constant 0 : index
    %10 = vector.load %arg4[%c0_5, %c0_6] : memref<40x32xf32, #tpu.memory_space<vmem>>, vector<40x32xf32>
    tpu.vector_store %arg4[%c0_5, %c0_6], %9 {strides = array<i32>} : memref<40x32xf32, #tpu.memory_space<vmem>>, vector<40x32xf32>,
    return
  }
  func.func @transform_0(%arg0: i32) -> (i32, i32) {
    %c0_i32 = arith.constant 0 : i32
    %c0_i32_0 = arith.constant 0 : i32
    return %arg0, %c0_i32 : i32, i32
  }
  func.func @transform_1(%arg0: i32) -> (i32, i32) {
    %c0_i32 = arith.constant 0 : i32
    %c0_i32_0 = arith.constant 0 : i32
    %c0_i32_1 = arith.constant 0 : i32
    return %c0_i32, %c0_i32_0 : i32, i32
  }
  func.func @transform_2(%arg0: i32) -> (i32, i32) {
    %c0_i32 = arith.constant 0 : i32
    %c0_i32_0 = arith.constant 0 : i32
    return %arg0, %c0_i32 : i32, i32
  }
  func.func @transform_3(%arg0: i32) -> (i32, i32) {
    %c0_i32 = arith.constant 0 : i32
    %c0_i32_0 = arith.constant 0 : i32
    return %arg0, %c0_i32 : i32, i32
  }
}

</mosaic_0001>

<bundles_post_ra>
// kernel: tpu_custom_call.1
= control target key start
LH: loop header
LB: loop body
LE: loop exit
PB: predicated region body
PF: predicated region fallthrough
CT: control target
= control target key end

     0   :  { %vm27_vm0 = vcmask 195584   ;;  %v904_v39 = vmov 683565275   ;;  %v905_v41 = vmov 2475754826   ;;  %s1503_s1 = inlined_call_operand.vmem [shape: f32[24,32], index: 1, kind: input, shape index: {}]   ;;  %s1504_s0 = inlined_call_operand.vmem [shape: f32[40,24], index: 0, kind: input, shape index: {}]   ;;  %s1505_s2 = inlined_call_operand.vmem [shape: f32[40,32], index: 2, kind: input, shape index: {}]   ;;  %s1506_s3 = inlined_call_operand.vmem [shape: f32[40,32], index: 3, kind: output, shape index: {}]  }
   0x1   :  { %v21_v0 = vld [vmem:[%s1503_s1 + $0x10] sm:$0xff]  ;;  %v20_v1 = vld [vmem:[%s1503_s1 + $0x8] sm:$0xff]  ;;  %v19_v2 = vld [vmem:[%s1503_s1] sm:$0xff]  ;;  %v906_v43 = vmov 2131351028  }
   0x2   :  { %56 = vmatpush.msra.mxu0 %v21_v0  ;;  %888 = vmatpush.msra.mxu1 %v21_v0  ;;  %v14_v3 = vld [vmem:[%s1504_s0] sm:$0xff]  ;;  %v15_v4 = vld [vmem:[%s1504_s0 + $0x8] sm:$0xff]  ;;  %v16_v5 = vld [vmem:[%s1504_s0 + $0x10] sm:$0xff]  ;;  %v907_v45 = vmov 2102212464  }
   0x3   :  { %889 = vmatpush.msra.mxu2 %v21_v0  ;;  %890 = vmatpush.msra.mxu3 %v21_v0  ;;  %v17_v6 = vld [vmem:[%s1504_s0 + $0x18] sm:$0xff]  ;;  %v18_v7 = vld [vmem:[%s1504_s0 + $0x20] sm:$0xff]  ;;  %v23_v9 = vld [vmem:[%s1505_s2 + $0x8] sm:$0xff]  ;;  %v908_v47 = vmov 920167782  }
   0x4   :  { %57 = vmatpush.msra.mxu0 %v20_v1  ;;  %891 = vmatpush.msra.mxu1 %v20_v1  ;;  %v22_v8 = vld [vmem:[%s1505_s2] sm:$0xff]  ;;  %v24_v28 = vld [vmem:[%s1505_s2 + $0x10] sm:$0xff]  ;;  %v909_v56 = vmov 1326507024  }
   0x5   :  { %892 = vmatpush.msra.mxu2 %v20_v1  ;;  %893 = vmatpush.msra.mxu3 %v20_v1 }
   0x6   :  { %58 = vmatpush.msra.mxu0 %v19_v2  ;;  %894 = vmatpush.msra.mxu1 %v19_v2 }
   0x7   :  { %895 = vmatpush.msra.mxu2 %v19_v2  ;;  %896 = vmatpush.msra.mxu3 %v19_v2 }
   0x8   :  { %868 = vmatmul.msk.f32.vlgmr.msra.gmra.mxu0 %vm27_vm0, %v14_v3  ;;  %869 = vmatmul.msk.f32.vlgmr.msra.gmra.mxu1 %vm27_vm0, %v15_v4 }
   0x9   :  { %870 = vmatmul.msk.f32.vlgmr.msra.gmra.mxu2 %vm27_vm0, %v16_v5  ;;  %871 = vmatmul.msk.f32.vlgmr.msra.gmra.mxu3 %vm27_vm0, %v17_v6 }
  0x11   :  { %872 = vmatmul.msk.f32.gmra.mxu3 %vm27_vm0, %v18_v7 }
  0x85   :  { %v60_v10 = vpop.f32.mrf.mxu0  ;;  %v63_v11 = vpop.f32.mrf.mxu1 }
  0x86   :  { %v961_v12 = vadd.f32 %v60_v10, %v22_v8  ;;  %v963_v13 = vadd.f32 %v63_v11, %v23_v9 }
  0x88   :  { %v78_v14 = vand.u32 2147483647, %v961_v12  ;;  %v81_v15 = vand.u32 2139095040, %v961_v12  ;;  %v233_v16 = vand.u32 2147483647, %v963_v13  ;;  %v236_v17 = vand.u32 2139095040, %v963_v13 }
  0x8a   :  { %v82_v18 = vshrl.u32 %v81_v15, 23  ;;  %v85_v19 = vand.u32 8388607, %v78_v14  ;;  %v237_v20 = vshrl.u32 %v236_v17, 23  ;;  %v240_v21 = vand.u32 8388607, %v233_v16 }
  0x8c   :  { %v873_v22 = vadd.s32 4294967169, %v82_v18  ;;  %v86_v23 = vor.u32 8388608, %v85_v19  ;;  %v876_v24 = vadd.s32 4294967169, %v237_v20  ;;  %v241_v26 = vor.u32 8388608, %v240_v21  ;;  %v66_v29 = vpop.f32.mrf.mxu2 }
  0x8d   :  { %v978_v34 = vadd.f32 %v66_v29, %v24_v28 }
  0x8e   :  { %v88_v25 = vadd.s32 1, %v873_v22  ;;  %v243_v27 = vadd.s32 1, %v876_v24  ;;  %v976_v31 = vshll.u32 %v86_v23, 8  ;;  %v984_v37 = vshll.u32 %v241_v26, 8 }
  0x8f   :  { %v391_v54 = vand.u32 2139095040, %v978_v34 }
  0x90   :  { %vm89_vm1 = vcmp.gt.s32.totalorder %v88_v25, 0  ;;  %vm244_vm2 = vcmp.gt.s32.totalorder %v243_v27, 0  ;;  %v127_v49 = vand.u32 65535, %v976_v31  ;;  %v128_v50 = vshrl.u32 %v976_v31, 16 }
  0x91   :  { %v90_v30 = vsel %vm89_vm1, %v88_v25, 0  ;;  %v245_v33 = vsel %vm244_vm2, %v243_v27, 0  ;;  %v1006_v0 = vand.u32 65535, %v984_v37  ;;  %v1037_v19 = vshrl.u32 %v984_v37, 16 }
  0x92   :  { %v92_v32 = vand.u32 31, %v90_v30  ;;  %v980_v35 = vshrl.u32 %v90_v30, 5  ;;  %v982_v36 = vand.u32 31, %v245_v33  ;;  %v1043_v26 = vshrl.u32 %v245_v33, 5 }
  0x94   :  { %v93_v38 = vsub.s32 32, %v92_v32  ;;  %v95_v40 = vshll.u32 %v904_v39, %v92_v32  ;;  %v98_v42 = vshll.u32 %v905_v41, %v92_v32  ;;  %v101_v44 = vshll.u32 %v906_v43, %v92_v32 }
  0x95   :  { %v104_v46 = vshll.u32 %v907_v45, %v92_v32  ;;  %v107_v48 = vshll.u32 %v908_v47, %v92_v32  ;;  %vm110_vm3 = vcmp.lt.s32.totalorder %v980_v35, 1  ;;  %vm113_vm4 = vcmp.lt.s32.totalorder %v980_v35, 4 }
  0x96   :  { %v96_v51 = vshrl.u32 %v905_v41, %v93_v38  ;;  %v99_v52 = vshrl.u32 %v906_v43, %v93_v38  ;;  %v102_v53 = vshrl.u32 %v907_v45, %v93_v38  ;;  %v105_v55 = vshrl.u32 %v908_v47, %v93_v38 }
  0x97   :  { %v108_v57 = vshrl.u32 %v909_v56, %v93_v38  ;;  %v1002_v61 = vsub.s32 32, %v982_v36  ;;  %vm112_vm5 = vcmp.lt.s32.totalorder %v980_v35, 3  ;;  %v94_v1 = vshrl.u32 %v904_v39, %v93_v38 }
  0x98   :  { %v97_v58 = vor.u32 %v96_v51, %v95_v40  ;;  %v100_v59 = vor.u32 %v99_v52, %v98_v42  ;;  %v103_v60 = vor.u32 %v102_v53, %v101_v44  ;;  %v106_v62 = vor.u32 %v105_v55, %v104_v46 }
  0x99   :  { %v109_v63 = vor.u32 %v108_v57, %v107_v48  ;;  %vm111_vm6 = vcmp.lt.s32.totalorder %v980_v35, 2  ;;  %v250_v6 = vshll.u32 %v904_v39, %v982_v36  ;;  %v253_v7 = vshll.u32 %v905_v41, %v982_v36 }
  0x9a   :  { %v118_v2 = vsel %vm110_vm3, %v97_v58, %v100_v59  ;;  %v122_v3 = vsel %vm110_vm3, %v100_v59, %v103_v60  ;;  %v119_v4 = vsel %vm113_vm4, %v106_v62, 920167782  ;;  %v115_v8 = vsel %vm113_vm4, %v103_v60, 2102212464 }
  0x9b   :  { %v123_v5 = vsel %vm113_vm4, %v109_v63, 1326507024  ;;  %v120_v9 = vsel %vm112_vm5, %v103_v60, %v119_v4  ;;  %v251_v11 = vshrl.u32 %v905_v41, %v1002_v61  ;;  %v254_v18 = vshrl.u32 %v906_v43, %v1002_v61 }
  0x9c   :  { %v124_v10 = vsel %vm112_vm5, %v106_v62, %v123_v5  ;;  %v121_v15 = vsel %vm111_vm6, %v118_v2, %v120_v9  ;;  %v114_v24 = vsel %vm110_vm3, %v94_v1, %v97_v58  ;;  %v116_v25 = vsel %vm112_vm5, %v100_v59, %v115_v8 }
  0x9d   :  { %v125_v17 = vsel %vm111_vm6, %v122_v3, %v124_v10  ;;  %v151_v22 = vand.u32 65535, %v121_v15  ;;  %v152_v23 = vshrl.u32 %v121_v15, 16  ;;  %v1045_v27 = vor.u32 %v251_v11, %v250_v6 }
  0x9e   :  { %v129_v20 = vand.u32 65535, %v125_v17  ;;  %v130_v21 = vshrl.u32 %v125_v17, 16  ;;  %v1047_v32 = vor.u32 %v254_v18, %v253_v7  ;;  %v256_v44 = vshll.u32 %v906_v43, %v982_v36 }
  0x9f   :  { %v153_v38 = vmul.u32 %v151_v22, %v127_v49  ;;  %v154_v40 = vmul.u32 %v152_v23, %v127_v49  ;;  %v155_v42 = vmul.u32 %v151_v22, %v128_v50  ;;  %v257_v33 = vshrl.u32 %v907_v45, %v1002_v61 }
  0xa0   :  { %v131_v28 = vmul.u32 %v129_v20, %v127_v49  ;;  %v132_v29 = vmul.u32 %v130_v21, %v127_v49  ;;  %v133_v30 = vmul.u32 %v129_v20, %v128_v50  ;;  %v134_v46 = vmul.u32 %v130_v21, %v128_v50 }
  0xa1   :  { %v156_v53 = vmul.u32 %v152_v23, %v128_v50  ;;  %v157_v55 = vshll.u32 %v154_v40, 16  ;;  %v159_v57 = vshll.u32 %v155_v42, 16  ;;  %v259_v49 = vshll.u32 %v907_v45, %v982_v36 }
  0xa2   :  { %v135_v48 = vshll.u32 %v132_v29, 16  ;;  %v137_v51 = vshll.u32 %v133_v30, 16  ;;  %v136_v52 = vshrl.u32 %v132_v29, 16  ;;  %v138_v58 = vshrl.u32 %v133_v30, 16 }
  0xa3   :  { %v910_v60 = vmov 0   ;;  %vm161_vm8 = vc.u32 %v153_v38, %v157_v55  ;;  %v163_v63 = vadd.s32 %v157_v55, %v153_v38  ;;  %v260_v1 = vshrl.u32 %v908_v47, %v1002_v61 }
  0xa4   :  { %vm139_vm7 = vc.u32 %v131_v28, %v135_v48  ;;  %v141_v59 = vadd.s32 %v135_v48, %v131_v28  ;;  %v162_v50 = vsel %vm161_vm8, 1, %v910_v60  ;;  %v262_v3 = vshll.u32 %v908_v47, %v982_v36 }
  0xa5   :  { %v140_v62 = vsel %vm139_vm7, 1, %v910_v60  ;;  %v164_v5 = vadd.s32 %v162_v50, %v156_v53  ;;  %vm165_vm10 = vc.u32 %v163_v63, %v159_v57  ;;  %v258_v6 = vor.u32 %v257_v33, %v256_v44 }
  0xa6   :  { %v142_v2 = vadd.s32 %v140_v62, %v134_v46  ;;  %vm143_vm9 = vc.u32 %v141_v59, %v137_v51  ;;  %v166_v8 = vsel %vm165_vm10, 1, %v910_v60  ;;  %v261_v9 = vor.u32 %v260_v1, %v259_v49 }
  0xa7   :  { %v144_v4 = vsel %vm143_vm9, 1, %v910_v60  ;;  %v263_v10 = vshrl.u32 %v909_v56, %v1002_v61  ;;  %v158_v11 = vshrl.u32 %v154_v40, 16  ;;  %v168_v15 = vadd.s32 %v166_v8, %v164_v5 }
  0xa8   :  { %v146_v7 = vadd.s32 %v144_v4, %v142_v2  ;;  %vm265_vm11 = vcmp.lt.s32.totalorder %v1043_v26, 1  ;;  %vm267_vm12 = vcmp.lt.s32.totalorder %v1043_v26, 3  ;;  %vm266_vm13 = vcmp.lt.s32.totalorder %v1043_v26, 2 }
  0xa9   :  { %v264_v36 = vor.u32 %v263_v10, %v262_v3  ;;  %vm268_vm14 = vcmp.lt.s32.totalorder %v1043_v26, 4  ;;  %v160_v18 = vshrl.u32 %v155_v42, 16  ;;  %v169_v20 = vadd.s32 %v168_v15, %v158_v11 }
  0xaa   :  { %v147_v17 = vadd.s32 %v146_v7, %v136_v52  ;;  %v273_v21 = vsel %vm265_vm11, %v1045_v27, %v1047_v32  ;;  %v274_v22 = vsel %vm268_vm14, %v261_v9, 920167782  ;;  %v1077_v28 = vadd.s32 %v163_v63, %v159_v57 }
  0xab   :  { %v275_v29 = vsel %vm267_vm12, %v258_v6, %v274_v22  ;;  %v277_v30 = vsel %vm265_vm11, %v1047_v32, %v258_v6  ;;  %v117_v38 = vsel %vm111_vm6, %v114_v24, %v116_v25  ;;  %v170_v40 = vadd.s32 %v169_v20, %v160_v18 }
  0xac   :  { %v1075_v23 = vadd.s32 %v147_v17, %v138_v58  ;;  %v276_v42 = vsel %vm266_vm13, %v273_v21, %v275_v29  ;;  %v278_v44 = vsel %vm268_vm14, %v264_v36, 1326507024  ;;  %v75_v51 = vlaneseq }
  0xad   :  { %v279_v46 = vsel %vm267_vm12, %v261_v9, %v278_v44  ;;  %v306_v48 = vand.u32 65535, %v276_v42  ;;  %v174_v33 = vadd.s32 1, %v170_v40  ;;  %v307_v24 = vshrl.u32 %v276_v42, 16 }
  0xae   :  { %vm173_vm15 = vc.u32 %v1075_v23, %v1077_v28  ;;  %v280_v35 = vsel %vm266_vm13, %v277_v30, %v279_v46  ;;  %v171_v25 = vmul.u32 %v976_v31, %v117_v38  ;;  %v392_v49 = vshrl.u32 %v391_v54, 23 }
  0xaf   :  { %v284_v52 = vand.u32 65535, %v280_v35  ;;  %v285_v53 = vshrl.u32 %v280_v35, 16  ;;  %v310_v55 = vmul.u32 %v306_v48, %v1037_v19  ;;  %v175_v57 = vsel %vm173_vm15, %v174_v33, %v170_v40 }
  0xb0   :  { %v308_v58 = vmul.u32 %v306_v48, %v1006_v0  ;;  %v309_v59 = vmul.u32 %v307_v24, %v1006_v0  ;;  %v176_v62 = vadd.s32 %v175_v57, %v171_v25  ;;  %v249_v31 = vshrl.u32 %v904_v39, %v1002_v61 }
  0xb1   :  { %v286_v63 = vmul.u32 %v284_v52, %v1006_v0  ;;  %v287_v1 = vmul.u32 %v285_v53, %v1006_v0  ;;  %v288_v2 = vmul.u32 %v284_v52, %v1037_v19  ;;  %v270_v50 = vsel %vm268_vm14, %v258_v6, 2102212464 }
  0xb2   :  { %v312_v3 = vshll.u32 %v309_v59, 16  ;;  %v314_v4 = vshll.u32 %v310_v55, 16  ;;  %v177_v5 = vadd.s32 536870912, %v176_v62  ;;  %v311_v54 = vmul.u32 %v307_v24, %v1037_v19 }
  0xb3   :  { %v290_v7 = vshll.u32 %v287_v1, 16  ;;  %v292_v8 = vshll.u32 %v288_v2, 16  ;;  %v289_v9 = vmul.u32 %v285_v53, %v1037_v19  ;;  %v879_v0 = vadd.s32 4294967169, %v392_v49 }
  0xb4   :  { %vm316_vm0 = vc.u32 %v308_v58, %v312_v3  ;;  %v318_v10 = vadd.s32 %v312_v3, %v308_v58  ;;  %v178_v11 = vshrl.u32 %v177_v5, 30  ;;  %v388_v36 = vand.u32 2147483647, %v978_v34 }
  0xb5   :  { %vm294_vm1 = vc.u32 %v286_v63, %v290_v7  ;;  %v296_v15 = vadd.s32 %v290_v7, %v286_v63  ;;  %v317_v61 = vsel %vm316_vm0, 1, %v910_v60  ;;  %v269_v20 = vsel %vm265_vm11, %v249_v31, %v1045_v27 }
  0xb6   :  { %v295_v17 = vsel %vm294_vm1, 1, %v910_v60  ;;  %v319_v6 = vadd.s32 %v317_v61, %v311_v54  ;;  %vm320_vm2 = vc.u32 %v318_v10, %v314_v4  ;;  %v179_v18 = vshll.u32 %v178_v11, 30 }
  0xb7   :  { %v297_v19 = vadd.s32 %v295_v17, %v289_v9  ;;  %vm298_vm3 = vc.u32 %v296_v15, %v292_v8  ;;  %v271_v21 = vsel %vm267_vm12, %v1047_v32, %v270_v50  ;;  %v321_v29 = vsel %vm320_vm2, 1, %v910_v60 }
  0xb8   :  { %v299_v22 = vsel %vm298_vm3, 1, %v910_v60  ;;  %v398_v30 = vadd.s32 1, %v879_v0  ;;  %v180_v38 = vsub.s32 %v176_v62, %v179_v18  ;;  %v291_v40 = vshrl.u32 %v287_v1, 16 }
  0xb9   :  { %v301_v42 = vadd.s32 %v299_v22, %v297_v19  ;;  %v323_v44 = vadd.s32 %v321_v29, %v319_v6  ;;  %vm80_vm4 = vcmp.lt.s32.totalorder %v961_v12, 0  ;;  %v202_v46 = vsub.s32 4, %v178_v11 }
  0xba   :  { %v313_v48 = vshrl.u32 %v309_v59, 16  ;;  %vm399_vm5 = vcmp.gt.s32.totalorder %v398_v30, 0  ;;  %vm181_vm6 = vcmp.lt.s32.totalorder %v180_v38, 0  ;;  %v182_v27 = vsub.s32 0, %v180_v38 }
  0xbb   :  { %v293_v33 = vshrl.u32 %v288_v2, 16  ;;  %v302_v35 = vadd.s32 %v301_v42, %v291_v40  ;;  %v272_v32 = vsel %vm266_vm13, %v269_v20, %v271_v21  ;;  %v315_v24 = vshrl.u32 %v310_v55, 16 }
  0xbc   :  { %v324_v25 = vadd.s32 %v323_v44, %v313_v48  ;;  %v400_v52 = vsel %vm399_vm5, %v398_v30, 0  ;;  %v183_v53 = vsel %vm181_vm6, %v182_v27, %v180_v38  ;;  %v1127_v58 = vadd.s32 %v318_v10, %v314_v4  ;;  %v69_v27 = vpop.f32.mrf.mxu3 }
  0xbd   :  { %v1125_v57 = vadd.s32 %v302_v35, %v293_v33  ;;  %v395_v49 = vand.u32 8388607, %v388_v36  ;;  %v184_v59 = vclz %v183_v53  ;;  %v203_v62 = vsel %vm80_vm4, %v202_v46, %v178_v11 }
  0xbe   :  { %v325_v63 = vadd.s32 %v324_v25, %v315_v24  ;;  %v402_v1 = vand.u32 31, %v400_v52  ;;  %v1134_v26 = vand.u32 127, %v75_v51  ;;  %vm1138_vm7 = vcmp.le.f32.partialorder %v78_v14, 0.7853982 }
  0xbf   :  { %v172_v2 = vadd.s32 %v1077_v28, %v1075_v23  ;;  %v874_v31 = vadd.s32 4294967294, %v184_v59  ;;  %vm328_vm8 = vc.u32 %v1125_v57, %v1127_v58  ;;  %v205_v4 = vsel %vm1138_vm7, 0, %v203_v62 }
  0xc0   :  { %v329_v50 = vadd.s32 1, %v325_v63  ;;  %v403_v3 = vsub.s32 32, %v402_v1  ;;  %v326_v51 = vmul.u32 %v984_v37, %v272_v32  ;;  %v396_v5 = vor.u32 8388608, %v395_v49 }
  0xc1   :  { %v1149_v7 = vshrl.u32 %v400_v52, 5  ;;  %vm875_vm9 = vcmp.lt.s32.totalorder %v874_v31, 0  ;;  %v405_v8 = vshll.u32 %v904_v39, %v402_v1  ;;  %v408_v23 = vshll.u32 %v905_v41, %v402_v1 }
  0xc2   :  { %v330_v14 = vsel %vm328_vm8, %v329_v50, %v325_v63  ;;  %v187_v28 = vsel %vm875_vm9, 0, %v874_v31  ;;  %v406_v9 = vshrl.u32 %v905_v41, %v403_v3  ;;  %v409_v10 = vshrl.u32 %v906_v43, %v403_v3 }
  0xc3   :  { %v331_v54 = vadd.s32 %v330_v14, %v326_v51  ;;  %v188_v0 = vsub.s32 32, %v187_v28  ;;  %v192_v11 = vsub.s32 4294967266, %v187_v28  ;;  %v411_v15 = vshll.u32 %v906_v43, %v402_v1 }
  0xc4   :  { %v414_v37 = vshll.u32 %v907_v45, %v402_v1  ;;  %v189_v61 = vshll.u32 %v180_v38, %v187_v28  ;;  %v412_v6 = vshrl.u32 %v907_v45, %v403_v3  ;;  %v415_v18 = vshrl.u32 %v908_v47, %v403_v3  ;;  %v25_v38 = vld [vmem:[%s1505_s2 + $0x18] sm:$0xff] }
  0xc5   :  { %v332_v17 = vadd.s32 536870912, %v331_v54  ;;  %v190_v20 = vshrl.u32 %v172_v2, %v188_v0  ;;  %v193_v19 = vadd.s32 127, %v192_v11  ;;  %v417_v21 = vshll.u32 %v908_v47, %v402_v1 }
  0xc6   :  { %v418_v22 = vshrl.u32 %v909_v56, %v403_v3  ;;  %v222_v29 = vadd.s32 3, %v205_v4  ;;  %v407_v40 = vor.u32 %v406_v9, %v405_v8  ;;  %v410_v42 = vor.u32 %v409_v10, %v408_v23 }
  0xc7   :  { %v333_v30 = vshrl.u32 %v332_v17, 30  ;;  %v191_v44 = vor.u32 %v190_v20, %v189_v61  ;;  %v194_v46 = vshll.u32 %v193_v19, 23  ;;  %v416_v48 = vor.u32 %v415_v18, %v414_v37 }
  0xc8   :  { %vm420_vm10 = vcmp.lt.s32.totalorder %v1149_v7, 1  ;;  %vm235_vm11 = vcmp.lt.s32.totalorder %v963_v13, 0  ;;  %v413_v35 = vor.u32 %v412_v6, %v411_v15  ;;  %vm423_vm12 = vcmp.lt.s32.totalorder %v1149_v7, 4 }
  0xc9   :  { %v334_v33 = vshll.u32 %v333_v30, 30  ;;  %v195_v32 = vor.u32 4788187, %v194_v46  ;;  %v419_v24 = vor.u32 %v418_v22, %v417_v21  ;;  %vm422_vm13 = vcmp.lt.s32.totalorder %v1149_v7, 3 }
  0xca   :  { %v1168_v25 = vshll.u32 %v396_v5, 8  ;;  %vm421_vm14 = vcmp.lt.s32.totalorder %v1149_v7, 2  ;;  %v428_v53 = vsel %vm420_vm10, %v407_v40, %v410_v42  ;;  %v1175_v49 = vadd.f32 %v69_v27, %v25_v38  ;;  %v26_v7 = vld [vmem:[%s1505_s2 + $0x20] sm:$0xff] }
  0xcb   :  { %v1170_v52 = vsub.s32 %v331_v54, %v334_v33  ;;  %v196_v59 = vand.u32 2147483647, %v195_v32  ;;  %v198_v62 = vcvt.s32.f32 %v191_v44  ;;  %v1177_v63 = vand.u32 3, %v222_v29 }
  0xcc   :  { %vm1181_vm15 = vcmp.le.f32.partialorder %v233_v16, 0.7853982  ;;  %v429_v2 = vsel %vm423_vm12, %v416_v48, 920167782  ;;  %v357_v50 = vsub.s32 4, %v333_v30  ;;  %v432_v16 = vsel %vm420_vm10, %v410_v42, %v413_v35 }
  0xcd   :  { %vm336_vm0 = vcmp.lt.s32.totalorder %v1170_v52, 0  ;;  %v337_v31 = vsub.s32 0, %v1170_v52  ;;  %v430_v4 = vsel %vm422_vm13, %v413_v35, %v429_v2  ;;  %v199_v51 = vmul.f32 %v198_v62, %v196_v59 }
  0xce   :  { %v1193_v5 = vsel %vm421_vm14, %v428_v53, %v430_v4  ;;  %v433_v14 = vsel %vm423_vm12, %v419_v24, 1326507024  ;;  %v404_v23 = vshrl.u32 %v904_v39, %v403_v3  ;;  %v437_v54 = vand.u32 65535, %v1168_v25 }
  0xcf   :  { %v338_v8 = vsel %vm336_vm0, %v337_v31, %v1170_v52  ;;  %v434_v28 = vsel %vm422_vm13, %v416_v48, %v433_v14  ;;  %v200_v9 = vxor.u32 2147483648, %v199_v51  ;;  %v425_v0 = vsel %vm423_vm12, %v413_v35, 2102212464 }
  0xd0   :  { %v339_v10 = vclz %v338_v8  ;;  %v435_v11 = vsel %vm421_vm14, %v432_v16, %v434_v28  ;;  %v1210_v15 = vsel %vm235_vm11, %v357_v50, %v333_v30  ;;  %v438_v37 = vshrl.u32 %v1168_v25, 16 }
  0xd1   :  { %v439_v3 = vand.u32 65535, %v435_v11  ;;  %v461_v61 = vand.u32 65535, %v1193_v5  ;;  %v201_v17 = vsel %vm80_vm4, %v200_v9, %v199_v51  ;;  %v440_v18 = vshrl.u32 %v435_v11, 16 }
  0xd2   :  { %v877_v6 = vadd.s32 4294967294, %v339_v10  ;;  %v462_v20 = vshrl.u32 %v1193_v5, 16  ;;  %v1220_v19 = vsel %vm1138_vm7, %v961_v12, %v201_v17  ;;  %v327_v21 = vadd.s32 %v1127_v58, %v1125_v57 }
  0xd3   :  { %v1226_v22 = vsel %vm420_vm10, %v404_v23, %v407_v40  ;;  %v1228_v29 = vmul.u32 %v439_v3, %v438_v37  ;;  %v206_v30 = vmul.f32 %v1220_v19, %v1220_v19  ;;  %v1234_v44 = vsel %vm422_vm13, %v410_v42, %v425_v0 }
  0xd4   :  { %vm878_vm1 = vcmp.lt.s32.totalorder %v877_v6, 0  ;;  %v442_v55 = vmul.u32 %v440_v18, %v437_v54  ;;  %v360_v57 = vsel %vm1181_vm15, 0, %v1210_v15  ;;  %v441_v58 = vmul.u32 %v439_v3, %v437_v54 }
  0xd5   :  { %v342_v46 = vsel %vm878_vm1, 0, %v877_v6  ;;  %v463_v48 = vmul.u32 %v461_v61, %v437_v54  ;;  %v207_v40 = vmul.f32 -0.001358992, %v206_v30  ;;  %v214_v38 = vmul.f32 -0.00019511016, %v206_v30 }
  0xd6   :  { %v343_v27 = vsub.s32 32, %v342_v46  ;;  %v464_v33 = vmul.u32 %v462_v20, %v437_v54  ;;  %v347_v35 = vsub.s32 4294967266, %v342_v46  ;;  %v444_v32 = vmul.u32 %v440_v18, %v438_v37 }
  0xd7   :  { %v445_v24 = vshll.u32 %v442_v55, 16  ;;  %v447_v53 = vshll.u32 %v1228_v29, 16  ;;  %v208_v59 = vadd.f32 0.041655596, %v207_v40  ;;  %v215_v42 = vadd.f32 0.008332121, %v214_v38 }
  0xd8   :  { %v344_v62 = vshll.u32 %v1170_v52, %v342_v46  ;;  %v345_v2 = vshrl.u32 %v327_v21, %v343_v27  ;;  %v348_v31 = vadd.s32 127, %v347_v35  ;;  %v465_v4 = vmul.u32 %v461_v61, %v438_v37 }
  0xd9   :  { %vm449_vm2 = vc.u32 %v441_v58, %v445_v24  ;;  %v451_v50 = vadd.s32 %v445_v24, %v441_v58  ;;  %v209_v51 = vmul.f32 %v208_v59, %v206_v30  ;;  %v216_v5 = vmul.f32 %v215_v42, %v206_v30 }
  0xda   :  { %v450_v16 = vsel %vm449_vm2, 1, %v910_v60  ;;  %v467_v14 = vshll.u32 %v464_v33, 16  ;;  %v346_v8 = vor.u32 %v345_v2, %v344_v62  ;;  %v349_v23 = vshll.u32 %v348_v31, 23 }
  0xdb   :  { %v452_v28 = vadd.s32 %v450_v16, %v444_v32  ;;  %vm453_vm3 = vc.u32 %v451_v50, %v447_v53  ;;  %v210_v54 = vadd.f32 -0.4999988, %v209_v51  ;;  %v217_v9 = vadd.f32 -0.16666654, %v216_v5 }
  0xdc   :  { %vm228_vm4 = vcmp.eq.s32.totalorder %v1177_v63, 2  ;;  %v446_v10 = vshrl.u32 %v442_v55, 16  ;;  %v454_v52 = vsel %vm453_vm3, 1, %v910_v60  ;;  %vm225_vm5 = vcmp.eq.s32.totalorder %v1177_v63, 0 }
  0xdd   :  { %v350_v0 = vor.u32 4788187, %v349_v23  ;;  %v456_v11 = vadd.s32 %v454_v52, %v452_v28  ;;  %v466_v3 = vmul.u32 %v462_v20, %v438_v37  ;;  %v469_v61 = vshll.u32 %v465_v4, 16 }
  0xde   :  { %vm77_vm6 = vcmp.lt.s32.totalorder %v1134_v26, 24  ;;  %v211_v17 = vmul.f32 %v210_v54, %v206_v30  ;;  %v218_v6 = vmul.f32 %v217_v9, %v206_v30  ;;  %vm224_vm7 = vcmp.lt.s32.totalorder %v1177_v63, 2 }
  0xdf   :  { %vm471_vm8 = vc.u32 %v463_v48, %v467_v14  ;;  %v473_v18 = vadd.s32 %v467_v14, %v463_v48  ;;  %vm221_vm9 = vweird.f32 %v961_v12  ;;  %v351_v21 = vand.u32 2147483647, %v350_v0 }
  0xe0   :  { %v353_v55 = vcvt.s32.f32 %v346_v8  ;;  %v457_v46 = vadd.s32 %v456_v11, %v446_v10  ;;  %v472_v58 = vsel %vm471_vm8, 1, %v910_v60  ;;  %v212_v40 = vadd.f32 1.0, %v211_v17 }
  0xe1   :  { %v219_v38 = vadd.f32 1.0, %v218_v6  ;;  %v474_v27 = vadd.s32 %v472_v58, %v466_v3  ;;  %vm475_vm10 = vc.u32 %v473_v18, %v469_v61  ;;  %v448_v20 = vshrl.u32 %v1228_v29, 16 }
  0xe2   :  { %v354_v37 = vmul.f32 %v353_v55, %v351_v21  ;;  %v468_v35 = vshrl.u32 %v464_v33, 16  ;;  %v476_v30 = vsel %vm475_vm10, 1, %v910_v60  ;;  %v229_v48 = vxor.u32 2147483648, %v212_v40 }
  0xe3   :  { %v220_v32 = vmul.f32 %v219_v38, %v1220_v19  ;;  %v478_v24 = vadd.s32 %v476_v30, %v474_v27  ;;  %v543_v53 = vand.u32 2147483647, %v1175_v49  ;;  %vm858_vm12 = vcmask 261120  }
  0xe4   :  { %v355_v59 = vxor.u32 2147483648, %v354_v37  ;;  %v427_v42 = vsel %vm421_vm14, %v1226_v22, %v1234_v44  ;;  %v458_v62 = vadd.s32 %v457_v46, %v448_v20  ;;  %v377_v29 = vadd.s32 3, %v360_v57  ;;  %v72_v22 = vpop.f32.mrf.mxu3 }
  0xe5   :  { %v226_v2 = vxor.u32 2147483648, %v220_v32  ;;  %v470_v33 = vshrl.u32 %v465_v4, 16  ;;  %v479_v19 = vadd.s32 %v478_v24, %v468_v35  ;;  %v230_v31 = vsel %vm228_vm4, %v229_v48, %v220_v32 }
  0xe6   :  { %v356_v50 = vsel %vm235_vm11, %v355_v59, %v354_v37  ;;  %v477_v51 = vadd.s32 %v473_v18, %v469_v61  ;;  %v546_v5 = vand.u32 2139095040, %v1175_v49  ;;  %v550_v4 = vand.u32 8388607, %v543_v53 }
  0xe7   :  { %v227_v15 = vsel %vm225_vm5, %v212_v40, %v226_v2  ;;  %v359_v44 = vsel %vm1181_vm15, %v963_v13, %v356_v50  ;;  %v480_v57 = vadd.s32 %v479_v19, %v470_v33  ;;  %v481_v28 = vmul.u32 %v1168_v25, %v427_v42 }
  0xe8   :  { %v231_v16 = vsel %vm224_vm7, %v227_v15, %v230_v31  ;;  %v361_v14 = vmul.f32 %v359_v44, %v359_v44  ;;  %vm483_vm11 = vc.u32 %v458_v62, %v477_v51  ;;  %v547_v8 = vshrl.u32 %v546_v5, 23 }
  0xe9   :  { %v232_v23 = vsel %vm221_vm9, nan, %v231_v16  ;;  %v484_v54 = vadd.s32 1, %v480_v57  ;;  %v1281_v9 = vadd.f32 %v72_v22, %v26_v7  ;;  %v551_v11 = vor.u32 8388608, %v550_v4 }
  0xea   :  { %v853_v1 = vsel %vm77_vm6, %v961_v12, %v232_v23  ;;  %v362_v10 = vmul.f32 -0.001358992, %v361_v14  ;;  %v369_v52 = vmul.f32 -0.00019511016, %v361_v14  ;;  %v882_v0 = vadd.s32 4294967169, %v547_v8 }
  0xeb   :  { %859 = vst.msk [vmem:[%s1506_s3] sm:$0xff] %vm858_vm12, %v853_v1  ;;  %v485_v63 = vsel %vm483_vm11, %v484_v54, %v480_v57  ;;  %v378_v6 = vand.u32 3, %v377_v29  ;;  %v701_v18 = vand.u32 2139095040, %v1281_v9  ;;  %v1291_v58 = vshll.u32 %v551_v11, 8 }
  0xec   :  { %v363_v3 = vadd.f32 0.041655596, %v362_v10  ;;  %v370_v61 = vadd.f32 0.008332121, %v369_v52  ;;  %v486_v25 = vadd.s32 %v485_v63, %v481_v28  ;;  %v553_v17 = vadd.s32 1, %v882_v0 }
  0xed   :  { %vm380_vm14 = vcmp.eq.s32.totalorder %v378_v6, 0  ;;  %vm390_vm15 = vcmp.lt.s32.totalorder %v978_v34, 0  ;;  %v702_v20 = vshrl.u32 %v701_v18, 23  ;;  %vm379_vm0 = vcmp.lt.s32.totalorder %v378_v6, 2 }
  0xee   :  { %v364_v21 = vmul.f32 %v363_v3, %v361_v14  ;;  %v371_v55 = vmul.f32 %v370_v61, %v361_v14  ;;  %v487_v12 = vadd.s32 536870912, %v486_v25  ;;  %vm554_vm13 = vcmp.gt.s32.totalorder %v553_v17, 0 }
  0xef   :  { %v555_v46 = vsel %vm554_vm13, %v553_v17, 0  ;;  %vm383_vm1 = vcmp.eq.s32.totalorder %v378_v6, 2  ;;  %vm376_vm2 = vweird.f32 %v963_v13  ;;  %v482_v48 = vadd.s32 %v477_v51, %v458_v62 }
  0xf0   :  { %v365_v40 = vadd.f32 -0.4999988, %v364_v21  ;;  %v372_v38 = vadd.f32 -0.16666654, %v371_v55  ;;  %v488_v27 = vshrl.u32 %v487_v12, 30  ;;  %v557_v37 = vand.u32 31, %v555_v46 }
  0xf1   :  { %v1296_v59 = vand.u32 65535, %v1291_v58  ;;  %v698_v42 = vand.u32 2147483647, %v1281_v9  ;;  %vm1301_vm3 = vcmp.le.f32.partialorder %v388_v36, 0.7853982  ;;  %v1305_v50 = vshrl.u32 %v555_v46, 5 }
  0xf2   :  { %v366_v35 = vmul.f32 %v365_v40, %v361_v14  ;;  %v373_v30 = vmul.f32 %v372_v38, %v361_v14  ;;  %v489_v32 = vshll.u32 %v488_v27, 30  ;;  %v558_v24 = vsub.s32 32, %v557_v37 }
  0xf3   :  { %v512_v31 = vsub.s32 4, %v488_v27  ;;  %v1309_v51 = vshrl.u32 %v1291_v58, 16  ;;  %v885_v5 = vadd.s32 4294967169, %v702_v20  ;;  %v560_v57 = vshll.u32 %v904_v39, %v557_v37 }
  0xf4   :  { %v367_v2 = vadd.f32 1.0, %v366_v35  ;;  %v374_v29 = vadd.f32 1.0, %v373_v30  ;;  %v490_v19 = vsub.s32 %v486_v25, %v489_v32  ;;  %v561_v62 = vshrl.u32 %v905_v41, %v558_v24 }
  0xf5   :  { %v563_v36 = vshll.u32 %v905_v41, %v557_v37  ;;  %v564_v4 = vshrl.u32 %v906_v43, %v558_v24  ;;  %v567_v16 = vshrl.u32 %v907_v45, %v558_v24  ;;  %v513_v23 = vsel %vm390_vm15, %v512_v31, %v488_v27 }
  0xf6   :  { %v375_v7 = vmul.f32 %v374_v29, %v359_v44  ;;  %v384_v22 = vxor.u32 2147483648, %v367_v2  ;;  %vm491_vm4 = vcmp.lt.s32.totalorder %v490_v19, 0  ;;  %v492_v15 = vsub.s32 0, %v490_v19 }
  0xf7   :  { %v566_v28 = vshll.u32 %v906_v43, %v557_v37  ;;  %v562_v1 = vor.u32 %v561_v62, %v560_v57  ;;  %v570_v10 = vshrl.u32 %v908_v47, %v558_v24  ;;  %v569_v0 = vshll.u32 %v907_v45, %v557_v37 }
  0xf8   :  { %v381_v14 = vxor.u32 2147483648, %v375_v7  ;;  %v493_v8 = vsel %vm491_vm4, %v492_v15, %v490_v19  ;;  %v385_v44 = vsel %vm383_vm1, %v384_v22, %v375_v7  ;;  %v572_v63 = vshll.u32 %v908_v47, %v557_v37 }
  0xf9   :  { %v494_v54 = vclz %v493_v8  ;;  %v573_v11 = vshrl.u32 %v909_v56, %v558_v24  ;;  %v565_v25 = vor.u32 %v564_v4, %v563_v36  ;;  %v568_v17 = vor.u32 %v567_v16, %v566_v28 }
  0xfa   :  { %v382_v52 = vsel %vm380_vm14, %v367_v2, %v381_v14  ;;  %v571_v21 = vor.u32 %v570_v10, %v569_v0  ;;  %v708_v12 = vadd.s32 1, %v885_v5  ;;  %v515_v40 = vsel %vm1301_vm3, 0, %v513_v23 }
  0xfb   :  { %v386_v3 = vsel %vm379_vm0, %v382_v52, %v385_v44  ;;  %v880_v61 = vadd.s32 4294967294, %v494_v54  ;;  %v574_v55 = vor.u32 %v573_v11, %v572_v63  ;;  %v559_v6 = vshrl.u32 %v904_v39, %v558_v24 }
  0xfc   :  { %v387_v18 = vsel %vm376_vm2, nan, %v386_v3  ;;  %vm575_vm7 = vcmp.lt.s32.totalorder %v1305_v50, 1  ;;  %vm576_vm8 = vcmp.lt.s32.totalorder %v1305_v50, 2  ;;  %vm578_vm9 = vcmp.lt.s32.totalorder %v1305_v50, 4 }
  0xfd   :  { %v854_v46 = vsel %vm77_vm6, %v963_v13, %v387_v18  ;;  %vm881_vm5 = vcmp.lt.s32.totalorder %v880_v61, 0  ;;  %v580_v37 = vsel %vm578_vm9, %v568_v17, 2102212464  ;;  %v583_v20 = vsel %vm575_vm7, %v562_v1, %v565_v25 }
  0xfe   :  { %860 = vst.msk [vmem:[%s1506_s3 + $0x8] sm:$0xff] %vm858_vm12, %v854_v46  ;;  %v497_v38 = vsel %vm881_vm5, 0, %v880_v61  ;;  %vm577_vm10 = vcmp.lt.s32.totalorder %v1305_v50, 3  ;;  %v584_v35 = vsel %vm578_vm9, %v571_v21, 920167782  ;;  %v587_v30 = vsel %vm575_vm7, %v565_v25, %v568_v17 }
  0xff   :  { %v498_v27 = vsub.s32 32, %v497_v38  ;;  %v502_v13 = vsub.s32 4294967266, %v497_v38  ;;  %v588_v32 = vsel %vm578_vm9, %v574_v55, 1326507024  ;;  %v499_v24 = vshll.u32 %v490_v19, %v497_v38 }
 0x100   :  { %v585_v31 = vsel %vm577_vm10, %v568_v17, %v584_v35  ;;  %v579_v62 = vsel %vm575_vm7, %v559_v6, %v562_v1  ;;  %v581_v5 = vsel %vm577_vm10, %v565_v25, %v580_v37  ;;  %v589_v22 = vsel %vm577_vm10, %v571_v21, %v588_v32 }
 0x101   :  { %v500_v2 = vshrl.u32 %v482_v48, %v498_v27  ;;  %v503_v29 = vadd.s32 127, %v502_v13  ;;  %v586_v7 = vsel %vm576_vm8, %v583_v20, %v585_v31  ;;  %v590_v36 = vsel %vm576_vm8, %v587_v30, %v589_v22 }
 0x102   :  { %v616_v4 = vand.u32 65535, %v586_v7  ;;  %v594_v16 = vand.u32 65535, %v590_v36  ;;  %v595_v14 = vshrl.u32 %v590_v36, 16  ;;  %v617_v8 = vshrl.u32 %v586_v7, 16 }
 0x103   :  { %v501_v15 = vor.u32 %v500_v2, %v499_v24  ;;  %v504_v57 = vshll.u32 %v503_v29, 23  ;;  %vm709_vm11 = vcmp.gt.s32.totalorder %v708_v12, 0  ;;  %v1348_v23 = vand.u32 8388607, %v698_v42 }
 0x104   :  { %v620_v48 = vmul.u32 %v616_v4, %v1309_v51  ;;  %v1350_v28 = vadd.s32 3, %v515_v40  ;;  %v1354_v44 = vsel %vm576_vm8, %v579_v62, %v581_v5  ;;  %v597_v54 = vmul.u32 %v595_v14, %v1296_v59 }
 0x105   :  { %v505_v19 = vor.u32 4788187, %v504_v57  ;;  %v598_v1 = vmul.u32 %v594_v16, %v1309_v51  ;;  %v508_v52 = vcvt.s32.f32 %v501_v15  ;;  %v619_v0 = vmul.u32 %v617_v8, %v1296_v59 }
 0x106   :  { %v710_v63 = vsel %vm709_vm11, %v708_v12, 0  ;;  %v596_v11 = vmul.u32 %v594_v16, %v1296_v59  ;;  %v599_v3 = vmul.u32 %v595_v14, %v1309_v51  ;;  %v600_v61 = vshll.u32 %v597_v54, 16 }
 0x107   :  { %v506_v10 = vand.u32 2147483647, %v505_v19  ;;  %v618_v25 = vmul.u32 %v616_v4, %v1296_v59  ;;  %v621_v50 = vmul.u32 %v617_v8, %v1309_v51  ;;  %v622_v18 = vshll.u32 %v619_v0, 16 }
 0x108   :  { %v624_v21 = vshll.u32 %v620_v48, 16  ;;  %v602_v55 = vshll.u32 %v598_v1, 16  ;;  %vm604_vm13 = vc.u32 %v596_v11, %v600_v61  ;;  %v606_v46 = vadd.s32 %v600_v61, %v596_v11 }
 0x109   :  { %v509_v17 = vmul.f32 %v508_v52, %v506_v10  ;;  %v712_v40 = vand.u32 31, %v710_v63  ;;  %v605_v38 = vsel %vm604_vm13, 1, %v910_v60  ;;  %vm626_vm14 = vc.u32 %v618_v25, %v622_v18 }
 0x10a   :  { %v628_v12 = vadd.s32 %v622_v18, %v618_v25  ;;  %v601_v27 = vshrl.u32 %v597_v54, 16  ;;  %v607_v13 = vadd.s32 %v605_v38, %v599_v3  ;;  %vm608_vm0 = vc.u32 %v606_v46, %v602_v55 }
 0x10b   :  { %v510_v6 = vxor.u32 2147483648, %v509_v17  ;;  %v627_v37 = vsel %vm626_vm14, 1, %v910_v60  ;;  %v609_v51 = vsel %vm608_vm0, 1, %v910_v60  ;;  %v1372_v24 = vsub.s32 32, %v712_v40 }
 0x10c   :  { %v629_v20 = vadd.s32 %v627_v37, %v621_v50  ;;  %vm630_vm1 = vc.u32 %v628_v12, %v624_v21  ;;  %v611_v30 = vadd.s32 %v609_v51, %v607_v13  ;;  %v623_v29 = vshrl.u32 %v619_v0, 16 }
 0x10d   :  { %v511_v59 = vsel %vm390_vm15, %v510_v6, %v509_v17  ;;  %v631_v32 = vsel %vm630_vm1, 1, %v910_v60  ;;  %v636_v62 = vmul.u32 %v1291_v58, %v1354_v44  ;;  %v603_v5 = vshrl.u32 %v598_v1, 16 }
 0x10e   :  { %v514_v35 = vsel %vm1301_vm3, %v978_v34, %v511_v59  ;;  %v633_v31 = vadd.s32 %v631_v32, %v629_v20  ;;  %v612_v7 = vadd.s32 %v611_v30, %v601_v27  ;;  %v625_v22 = vshrl.u32 %v620_v48, 16 }
 0x10f   :  { %v516_v2 = vmul.f32 %v514_v35, %v514_v35  ;;  %v1376_v15 = vshrl.u32 %v710_v63, 5  ;;  %v1378_v33 = vadd.s32 %v628_v12, %v624_v21  ;;  %v715_v14 = vshll.u32 %v904_v39, %v712_v40 }
 0x110   :  { %v634_v4 = vadd.s32 %v633_v31, %v623_v29  ;;  %v1380_v16 = vadd.s32 %v612_v7, %v603_v5  ;;  %v716_v8 = vshrl.u32 %v905_v41, %v1372_v24  ;;  %v719_v58 = vshrl.u32 %v906_v43, %v1372_v24 }
 0x111   :  { %v517_v57 = vmul.f32 -0.001358992, %v516_v2  ;;  %v524_v36 = vmul.f32 -0.00019511016, %v516_v2  ;;  %v722_v54 = vshrl.u32 %v907_v45, %v1372_v24  ;;  %v718_v1 = vshll.u32 %v905_v41, %v712_v40 }
 0x112   :  { %v635_v48 = vadd.s32 %v634_v4, %v625_v22  ;;  %vm638_vm15 = vc.u32 %v1380_v16, %v1378_v33  ;;  %v724_v10 = vshll.u32 %v907_v45, %v712_v40  ;;  %v725_v52 = vshrl.u32 %v908_v47, %v1372_v24 }
 0x113   :  { %v518_v19 = vadd.f32 0.041655596, %v517_v57  ;;  %v525_v44 = vadd.f32 0.008332121, %v524_v36  ;;  %v721_v3 = vshll.u32 %v906_v43, %v712_v40  ;;  %v1396_v61 = vor.u32 %v719_v58, %v718_v1 }
 0x114   :  { %v639_v11 = vadd.s32 1, %v635_v48  ;;  %v726_v25 = vor.u32 %v725_v52, %v724_v10  ;;  %v727_v17 = vshll.u32 %v908_v47, %v712_v40  ;;  %v728_v50 = vshrl.u32 %v909_v56, %v1372_v24 }
 0x115   :  { %v519_v0 = vmul.f32 %v518_v19, %v516_v2  ;;  %v526_v63 = vmul.f32 %v525_v44, %v516_v2  ;;  %v1401_v45 = vor.u32 %v722_v54, %v721_v3  ;;  %v706_v46 = vor.u32 8388608, %v1348_v23 }
 0x116   :  { %v640_v21 = vsel %vm638_vm15, %v639_v11, %v635_v48  ;;  %v1404_v6 = vor.u32 %v716_v8, %v715_v14  ;;  %v729_v38 = vor.u32 %v728_v50, %v727_v17  ;;  %v533_v27 = vand.u32 3, %v1350_v28 }
 0x117   :  { %v520_v18 = vadd.f32 -0.4999988, %v519_v0  ;;  %v527_v41 = vadd.f32 -0.16666654, %v526_v63  ;;  %v641_v55 = vadd.s32 %v640_v21, %v636_v62  ;;  %vm733_vm2 = vcmp.lt.s32.totalorder %v1376_v15, 4 }
 0x118   :  { %vm730_vm3 = vcmp.lt.s32.totalorder %v1376_v15, 1  ;;  %vm731_vm4 = vcmp.lt.s32.totalorder %v1376_v15, 2  ;;  %v739_v56 = vsel %vm733_vm2, %v726_v25, 920167782  ;;  %vm732_vm5 = vcmp.lt.s32.totalorder %v1376_v15, 3 }
 0x119   :  { %v521_v43 = vmul.f32 %v520_v18, %v516_v2  ;;  %v528_v12 = vmul.f32 %v527_v41, %v516_v2  ;;  %v642_v47 = vadd.s32 536870912, %v641_v55  ;;  %v742_v23 = vsel %vm730_vm3, %v1396_v61, %v1401_v45 }
 0x11a   :  { %v738_v37 = vsel %vm730_vm3, %v1404_v6, %v1396_v61  ;;  %v740_v59 = vsel %vm732_vm5, %v1401_v45, %v739_v56  ;;  %v743_v51 = vsel %vm733_vm2, %v729_v38, 1326507024  ;;  %v1430_v2 = vshll.u32 %v706_v46, 8 }
 0x11b   :  { %v522_v40 = vadd.f32 1.0, %v521_v43  ;;  %v529_v13 = vadd.f32 1.0, %v528_v12  ;;  %v1417_v28 = vshrl.u32 %v642_v47, 30  ;;  %v744_v32 = vsel %vm732_vm5, %v726_v25, %v743_v51 }
 0x11c   :  { %vm531_vm7 = vweird.f32 %v978_v34  ;;  %v745_v31 = vsel %vm731_vm4, %v742_v23, %v744_v32  ;;  %vm534_vm8 = vcmp.lt.s32.totalorder %v533_v27, 2  ;;  %v741_v5 = vsel %vm731_vm4, %v738_v37, %v740_v59 }
 0x11d   :  { %v530_v20 = vmul.f32 %v529_v13, %v514_v35  ;;  %v539_v30 = vxor.u32 2147483648, %v522_v40  ;;  %v644_v29 = vshll.u32 %v1417_v28, 30  ;;  %v749_v7 = vand.u32 65535, %v745_v31 }
 0x11e   :  { %vm535_vm9 = vcmp.eq.s32.totalorder %v533_v27, 0  ;;  %vm538_vm10 = vcmp.eq.s32.totalorder %v533_v27, 2  ;;  %v750_v22 = vshrl.u32 %v745_v31, 16  ;;  %v747_v4 = vand.u32 65535, %v1430_v2 }
 0x11f   :  { %v536_v62 = vxor.u32 2147483648, %v530_v20  ;;  %v645_v35 = vsub.s32 %v641_v55, %v644_v29  ;;  %v540_v36 = vsel %vm538_vm10, %v539_v30, %v530_v20  ;;  %v748_v14 = vshrl.u32 %v1430_v2, 16 }
 0x120   :  { %v772_v19 = vshrl.u32 %v741_v5, 16  ;;  %v752_v48 = vmul.u32 %v750_v22, %v747_v4  ;;  %v771_v52 = vand.u32 65535, %v741_v5  ;;  %v751_v63 = vmul.u32 %v749_v7, %v747_v4 }
 0x121   :  { %v537_v57 = vsel %vm535_vm9, %v522_v40, %v536_v62  ;;  %vm646_vm11 = vcmp.lt.s32.totalorder %v645_v35, 0  ;;  %v647_v58 = vsub.s32 0, %v645_v35  ;;  %v753_v54 = vmul.u32 %v749_v7, %v748_v14 }
 0x122   :  { %v541_v8 = vsel %vm534_vm8, %v537_v57, %v540_v36  ;;  %v755_v11 = vshll.u32 %v752_v48, 16  ;;  %v754_v3 = vmul.u32 %v750_v22, %v748_v14  ;;  %v774_v25 = vmul.u32 %v772_v19, %v747_v4 }
 0x123   :  { %v542_v44 = vsel %vm531_vm7, nan, %v541_v8  ;;  %v648_v10 = vsel %vm646_vm11, %v647_v58, %v645_v35  ;;  %v757_v50 = vshll.u32 %v753_v54, 16  ;;  %v773_v21 = vmul.u32 %v771_v52, %v747_v4 }
 0x124   :  { %v855_v1 = vsel %vm77_vm6, %v978_v34, %v542_v44  ;;  %v649_v0 = vclz %v648_v10  ;;  %vm759_vm13 = vc.u32 %v751_v63, %v755_v11  ;;  %v761_v18 = vadd.s32 %v755_v11, %v751_v63 }
 0x125   :  { %861 = vst.msk [vmem:[%s1506_s3 + $0x10] sm:$0xff] %vm858_vm12, %v855_v1  ;;  %v760_v41 = vsel %vm759_vm13, 1, %v910_v60  ;;  %v775_v34 = vmul.u32 %v771_v52, %v748_v14  ;;  %v777_v55 = vshll.u32 %v774_v25, 16  ;;  %v637_v46 = vadd.s32 %v1378_v33, %v1380_v16 }
 0x126   :  { %v883_v17 = vadd.s32 4294967294, %v649_v0  ;;  %v762_v38 = vadd.s32 %v760_v41, %v754_v3  ;;  %vm763_vm0 = vc.u32 %v761_v18, %v757_v50  ;;  %v756_v12 = vshrl.u32 %v752_v48, 16 }
 0x127   :  { %v764_v27 = vsel %vm763_vm0, 1, %v910_v60  ;;  %vm781_vm1 = vc.u32 %v773_v21, %v777_v55  ;;  %v776_v13 = vmul.u32 %v772_v19, %v748_v14  ;;  %v779_v37 = vshll.u32 %v775_v34, 16 }
 0x128   :  { %vm884_vm14 = vcmp.lt.s32.totalorder %v883_v17, 0  ;;  %v766_v40 = vadd.s32 %v764_v27, %v762_v38  ;;  %v782_v59 = vsel %vm781_vm1, 1, %v910_v60  ;;  %v783_v51 = vadd.s32 %v777_v55, %v773_v21 }
 0x129   :  { %v652_v43 = vsel %vm884_vm14, 0, %v883_v17  ;;  %v784_v16 = vadd.s32 %v782_v59, %v776_v13  ;;  %v714_v32 = vshrl.u32 %v904_v39, %v1372_v24  ;;  %v735_v29 = vsel %vm733_vm2, %v1401_v45, 2102212464 }
 0x12a   :  { %v653_v47 = vsub.s32 32, %v652_v43  ;;  %v657_v56 = vsub.s32 4294967266, %v652_v43  ;;  %v654_v23 = vshll.u32 %v645_v35, %v652_v43  ;;  %v767_v33 = vadd.s32 %v766_v40, %v756_v12 }
 0x12b   :  { %vm785_vm15 = vc.u32 %v783_v51, %v779_v37  ;;  %v758_v5 = vshrl.u32 %v753_v54, 16  ;;  %v778_v35 = vshrl.u32 %v774_v25, 16  ;;  %v734_v36 = vsel %vm730_vm3, %v714_v32, %v1404_v6 }
 0x12c   :  { %v655_v20 = vshrl.u32 %v637_v46, %v653_v47  ;;  %v658_v30 = vadd.s32 127, %v657_v56  ;;  %v786_v7 = vsel %vm785_vm15, 1, %v910_v60  ;;  %v736_v39 = vsel %vm732_vm5, %v1396_v61, %v735_v29 }
 0x12d   :  { %v788_v22 = vadd.s32 %v786_v7, %v784_v16  ;;  %v768_v24 = vadd.s32 %v767_v33, %v758_v5  ;;  %v780_v4 = vshrl.u32 %v775_v34, 16  ;;  %v787_v58 = vadd.s32 %v783_v51, %v779_v37 }
 0x12e   :  { %v656_v31 = vor.u32 %v655_v20, %v654_v23  ;;  %v659_v62 = vshll.u32 %v658_v30, 23  ;;  %v737_v60 = vsel %vm731_vm4, %v734_v36, %v736_v39  ;;  %vm545_vm3 = vcmp.lt.s32.totalorder %v1175_v49, 0 }
 0x12f   :  { %v789_v45 = vadd.s32 %v788_v22, %v778_v35  ;;  %vm793_vm2 = vc.u32 %v768_v24, %v787_v58  ;;  %v791_v6 = vmul.u32 %v1430_v2, %v737_v60  ;;  %v667_v61 = vsub.s32 4, %v1417_v28 }
 0x130   :  { %v660_v57 = vor.u32 4788187, %v659_v62  ;;  %v663_v8 = vcvt.s32.f32 %v656_v31  ;;  %vm1473_vm5 = vcmp.le.f32.partialorder %v543_v53, 0.7853982  ;;  %v792_v33 = vadd.s32 %v787_v58, %v768_v24 }
 0x131   :  { %v790_v19 = vadd.s32 %v789_v45, %v780_v4  ;;  %v668_v2 = vsel %vm545_vm3, %v667_v61, %v1417_v28  ;;  %vm686_vm10 = vweird.f32 %v1175_v49  ;;  %vm700_vm13 = vcmp.lt.s32.totalorder %v1281_v9, 0 }
 0x132   :  { %v661_v14 = vand.u32 2147483647, %v660_v57  ;;  %v670_v50 = vsel %vm1473_vm5, 0, %v668_v2  ;;  %vm699_vm14 = vcmp.le.f32.partialorder %v698_v42, 0.7853982 }
 0x133   :  { %v794_v48 = vadd.s32 1, %v790_v19  ;;  %v687_v46 = vadd.s32 3, %v670_v50 }
 0x134   :  { %v664_v44 = vmul.f32 %v663_v8, %v661_v14 }
 0x135   :  { %v795_v1 = vsel %vm793_vm2, %v794_v48, %v790_v19  ;;  %v688_v23 = vand.u32 3, %v687_v46  ;;  %vm841_vm2 = vweird.f32 %v1281_v9 }
 0x136   :  { %v665_v54 = vxor.u32 2147483648, %v664_v44  ;;  %v796_v52 = vadd.s32 %v795_v1, %v791_v6 }
 0x137   :  { %vm690_vm8 = vcmp.eq.s32.totalorder %v688_v23, 0  ;;  %vm693_vm9 = vcmp.eq.s32.totalorder %v688_v23, 2  ;;  %vm689_vm11 = vcmp.lt.s32.totalorder %v688_v23, 2 }
 0x138   :  { %v666_v15 = vsel %vm545_vm3, %v665_v54, %v664_v44  ;;  %v797_v11 = vadd.s32 536870912, %v796_v52 }
 0x139   :  { %v669_v0 = vsel %vm1473_vm5, %v1175_v49, %v666_v15 }
 0x13a   :  { %v671_v63 = vmul.f32 %v669_v0, %v669_v0  ;;  %v798_v17 = vshrl.u32 %v797_v11, 30 }
 0x13c   :  { %v672_v3 = vmul.f32 -0.001358992, %v671_v63  ;;  %v679_v25 = vmul.f32 -0.00019511016, %v671_v63  ;;  %v799_v41 = vshll.u32 %v798_v17, 30  ;;  %v822_v60 = vsub.s32 4, %v798_v17 }
 0x13e   :  { %v673_v53 = vadd.f32 0.041655596, %v672_v3  ;;  %v680_v18 = vadd.f32 0.008332121, %v679_v25  ;;  %v800_v55 = vsub.s32 %v796_v52, %v799_v41  ;;  %v823_v54 = vsel %vm700_vm13, %v822_v60, %v798_v17 }
 0x13f   :  { %v825_v1 = vsel %vm699_vm14, 0, %v823_v54 }
 0x140   :  { %v674_v21 = vmul.f32 %v673_v53, %v671_v63  ;;  %v681_v34 = vmul.f32 %v680_v18, %v671_v63  ;;  %vm801_vm4 = vcmp.lt.s32.totalorder %v800_v55, 0  ;;  %v802_v12 = vsub.s32 0, %v800_v55 }
 0x142   :  { %v675_v38 = vadd.f32 -0.4999988, %v674_v21  ;;  %v682_v43 = vadd.f32 -0.16666654, %v681_v34  ;;  %v803_v28 = vsel %vm801_vm4, %v802_v12, %v800_v55 }
 0x143   :  { %v804_v56 = vclz %v803_v28 }
 0x144   :  { %v676_v27 = vmul.f32 %v675_v38, %v671_v63  ;;  %v683_v47 = vmul.f32 %v682_v43, %v671_v63  ;;  %v842_v63 = vadd.s32 3, %v825_v1 }
 0x145   :  { %v886_v37 = vadd.s32 4294967294, %v804_v56 }
 0x146   :  { %v677_v40 = vadd.f32 1.0, %v676_v27  ;;  %v684_v13 = vadd.f32 1.0, %v683_v47  ;;  %v843_v25 = vand.u32 3, %v842_v63 }
 0x147   :  { %vm887_vm7 = vcmp.lt.s32.totalorder %v886_v37, 0 }
 0x148   :  { %v685_v59 = vmul.f32 %v684_v13, %v669_v0  ;;  %v694_v51 = vxor.u32 2147483648, %v677_v40  ;;  %v807_v30 = vsel %vm887_vm7, 0, %v886_v37  ;;  %vm845_vm0 = vcmp.eq.s32.totalorder %v843_v25, 0 }
 0x149   :  { %v808_v16 = vsub.s32 32, %v807_v30  ;;  %v812_v32 = vsub.s32 4294967266, %v807_v30  ;;  %v809_v5 = vshll.u32 %v800_v55, %v807_v30  ;;  %vm848_vm1 = vcmp.eq.s32.totalorder %v843_v25, 2 }
 0x14a   :  { %v691_v20 = vxor.u32 2147483648, %v685_v59  ;;  %v695_v31 = vsel %vm693_vm9, %v694_v51, %v685_v59  ;;  %vm844_vm15 = vcmp.lt.s32.totalorder %v843_v25, 2 }
 0x14b   :  { %v810_v7 = vshrl.u32 %v792_v33, %v808_v16  ;;  %v813_v35 = vadd.s32 127, %v812_v32 }
 0x14c   :  { %v692_v29 = vsel %vm690_vm8, %v677_v40, %v691_v20 }
 0x14d   :  { %v696_v62 = vsel %vm689_vm11, %v692_v29, %v695_v31  ;;  %v811_v36 = vor.u32 %v810_v7, %v809_v5  ;;  %v814_v39 = vshll.u32 %v813_v35, 23 }
 0x14e   :  { %v697_v22 = vsel %vm686_vm10, nan, %v696_v62 }
 0x14f   :  { %v856_v57 = vsel %vm77_vm6, %v1175_v49, %v697_v22  ;;  %v815_v24 = vor.u32 4788187, %v814_v39  ;;  %v818_v45 = vcvt.s32.f32 %v811_v36 }
 0x150   :  { %862 = vst.msk [vmem:[%s1506_s3 + $0x18] sm:$0xff] %vm858_vm12, %v856_v57 }
 0x151   :  { %v816_v4 = vand.u32 2147483647, %v815_v24 }
 0x153   :  { %v819_v14 = vmul.f32 %v818_v45, %v816_v4 }
 0x155   :  { %v820_v8 = vxor.u32 2147483648, %v819_v14 }
 0x157   :  { %v821_v58 = vsel %vm700_vm13, %v820_v8, %v819_v14 }
 0x158   :  { %v824_v49 = vsel %vm699_vm14, %v1281_v9, %v821_v58 }
 0x159   :  { %v826_v19 = vmul.f32 %v824_v49, %v824_v49 }
 0x15b   :  { %v827_v44 = vmul.f32 -0.001358992, %v826_v19  ;;  %v834_v48 = vmul.f32 -0.00019511016, %v826_v19 }
 0x15d   :  { %v828_v6 = vadd.f32 0.041655596, %v827_v44  ;;  %v835_v61 = vadd.f32 0.008332121, %v834_v48 }
 0x15f   :  { %v829_v10 = vmul.f32 %v828_v6, %v826_v19  ;;  %v836_v15 = vmul.f32 %v835_v61, %v826_v19 }
 0x161   :  { %v830_v52 = vadd.f32 -0.4999988, %v829_v10  ;;  %v837_v0 = vadd.f32 -0.16666654, %v836_v15 }
 0x163   :  { %v831_v11 = vmul.f32 %v830_v52, %v826_v19  ;;  %v838_v2 = vmul.f32 %v837_v0, %v826_v19 }
 0x165   :  { %v832_v3 = vadd.f32 1.0, %v831_v11  ;;  %v839_v42 = vadd.f32 1.0, %v838_v2 }
 0x167   :  { %v840_v50 = vmul.f32 %v839_v42, %v824_v49  ;;  %v849_v53 = vxor.u32 2147483648, %v832_v3 }
 0x169   :  { %v846_v18 = vxor.u32 2147483648, %v840_v50  ;;  %v850_v41 = vsel %vm848_vm1, %v849_v53, %v840_v50 }
 0x16b   :  { %v847_v17 = vsel %vm845_vm0, %v832_v3, %v846_v18 }
 0x16c   :  { %v851_v21 = vsel %vm844_vm15, %v847_v17, %v850_v41 }
 0x16d   :  { %v852_v34 = vsel %vm841_vm2, nan, %v851_v21 }
 0x16e   :  { %v857_v55 = vsel %vm77_vm6, %v1281_v9, %v852_v34 }
 0x16f   :  { %863 = vst.msk [vmem:[%s1506_s3 + $0x20] sm:$0xff] %vm858_vm12, %v857_v55 }

</bundles_post_ra>
